<compile_context>
chip_gen: v7x
topology: tpu7x:2x2x1
jax: 0.10.0
libtpu: 0.0.40
codegen_flags: <defaults>
</compile_context>

<pallas_src>
import jax
import jax.numpy as jnp
from jax.experimental import pallas as pl
from jax.experimental.pallas import tpu as pltpu


def _round_up(x, m):
    return (x + m - 1) // m * m


def _expert_kernel_f32(x_ref, w1_ref, b1_ref, w2_ref, b2_ref, o_ref):
    """f32 output: accumulate partial sums directly in the resident o_ref."""
    # x_ref:  (tm, dim_p)    bf16 token tile (resident across the k axis)
    # w1_ref: (1, dim_p, tk) bf16 pre-blocked w1 chunk (contiguous DMA)
    # b1_ref: (1, tk)        f32 chunk of bias1
    # w2_ref: (tk, dim_p)    bf16 chunk of w2 rows
    # b2_ref: (1, dim_p)     f32 bias2 (constant across the grid)
    # o_ref:  (tm, dim_p)    f32 output tile == accumulator (resident over k)
    k = pl.program_id(1)

    @pl.when(k == 0)
    def _():
        # Seed the accumulator with bias2 so there is no finalize pass at all.
        o_ref[...] = jnp.broadcast_to(b2_ref[...], o_ref.shape)

    h = jnp.dot(x_ref[...], w1_ref[0], preferred_element_type=jnp.float32)
    h = jnp.maximum(h + b1_ref[...], 0.0)                 # bias1 + ReLU in f32
    o_ref[...] += jnp.dot(h.astype(w2_ref.dtype), w2_ref[...],
                          preferred_element_type=jnp.float32)


def _expert_kernel_acc(x_ref, w1_ref, b1_ref, w2_ref, b2_ref, o_ref, acc_ref):
    """Non-f32 output: accumulate in an f32 VMEM scratch, cast at the end."""
    k = pl.program_id(1)

    @pl.when(k == 0)
    def _():
        acc_ref[...] = jnp.broadcast_to(b2_ref[...], acc_ref.shape)

    h = jnp.dot(x_ref[...], w1_ref[0], preferred_element_type=jnp.float32)
    h = jnp.maximum(h + b1_ref[...], 0.0)
    acc_ref[...] += jnp.dot(h.astype(w2_ref.dtype), w2_ref[...],
                            preferred_element_type=jnp.float32)

    @pl.when(k == pl.num_programs(1) - 1)
    def _():
        o_ref[...] = acc_ref[...].astype(o_ref.dtype)      # pure cast + store


def prepare_expert_params(w1, b1, w2, b2, *, tk=512):
    """One-time weight prep (do NOT call per forward).

    Pads feature dims to multiples of 128, casts to bf16 for the MXU, and
    pre-blocks w1 into (n_k, dim_p, tk) so each k-chunk DMA is contiguous.
    Weights are stored as (in_features, out_features) (transposed vs torch).
    """
    dim, inter = w1.shape
    dim_p = _round_up(dim, 128)
    inter_p = _round_up(inter, 128)
    tk_eff = min(tk, inter_p)
    inter_p = _round_up(inter_p, tk_eff)
    n_k = inter_p // tk_eff

    w1p = jnp.pad(w1, ((0, dim_p - dim), (0, inter_p - inter))).astype(jnp.bfloat16)
    w1b = w1p.reshape(dim_p, n_k, tk_eff).transpose(1, 0, 2)   # (n_k, dim_p, tk)
    w2b = jnp.pad(w2, ((0, inter_p - inter), (0, dim_p - dim))).astype(jnp.bfloat16)
    b1p = jnp.pad(b1, (0, inter_p - inter)).astype(jnp.float32).reshape(1, inter_p)
    b2p = jnp.pad(b2, (0, dim_p - dim)).astype(jnp.float32).reshape(1, dim_p)

    return dict(w1=w1b, b1=b1p, w2=w2b, b2=b2p,
                dim=dim, inter=inter, dim_p=dim_p, inter_p=inter_p, tk=tk_eff)


def expert_forward(x, params, *, tm=512, weight_buffers=None):
    """x: (..., dim).  Returns same shape / dtype.  `params` from
    prepare_expert_params (cached, padded, bf16, pre-blocked weights)."""
    dim, dim_p = params["dim"], params["dim_p"]
    inter_p, tk = params["inter_p"], params["tk"]
    orig_shape = x.shape
    orig_dtype = x.dtype

    x2 = x.reshape(-1, dim)
    M = x2.shape[0]

    # Token tile: multiple of 16 (bf16 sublane packing), clamped to problem.
    tm_eff = min(tm, _round_up(M, 16))
    # If we'd only produce one token block and the tile is big, halve it so
    # the "parallel" axis exposes >= 2 blocks (keeps both v7x TCs busy).
    if M <= tm_eff and tm_eff >= 256:
        tm_eff = _round_up((tm_eff + 1) // 2, 16)
    M_p = _round_up(M, tm_eff)
    grid_m = M_p // tm_eff
    n_k = inter_p // tk

    # Per-call activation prep only (weights are already padded/cast/blocked).
    xb = jnp.pad(x2, ((0, M_p - M), (0, dim_p - dim))).astype(jnp.bfloat16)

    use_acc = jnp.dtype(orig_dtype) != jnp.dtype(jnp.float32)
    out_bytes = jnp.dtype(orig_dtype).itemsize
    n_wbuf = weight_buffers if weight_buffers is not None else 2

    # Actual resident set -> VMEM request (fits v7x 64 MiB, uses v5e/v6e 128).
    vmem_bytes = (
        2 * tm_eff * dim_p * 2                  # x tile (bf16), double-buffered
        + n_wbuf * dim_p * tk * 2               # w1 chunk (bf16)
        + n_wbuf * tk * dim_p * 2               # w2 chunk (bf16)
        + 2 * 8 * (tk + dim_p) * 4              # biases (sublane-padded f32)
        + 2 * tm_eff * dim_p * out_bytes        # output tile
        + (tm_eff * dim_p * 4 if use_acc else 0)  # f32 accumulator scratch
    )
    vmem_limit = int(min(max(vmem_bytes * 1.4 + (4 << 20), 32 << 20), 100 << 20))

    w_kwargs = {}
    if weight_buffers is not None and weight_buffers != 2:
        w_kwargs = dict(pipeline_mode=pl.Buffered(weight_buffers))

    in_specs = [
        pl.BlockSpec((tm_eff, dim_p), lambda i, k: (i, 0)),               # x
        pl.BlockSpec((1, dim_p, tk), lambda i, k: (k, 0, 0), **w_kwargs),  # w1
        pl.BlockSpec((1, tk), lambda i, k: (0, k)),                        # b1
        pl.BlockSpec((tk, dim_p), lambda i, k: (k, 0), **w_kwargs),        # w2
        pl.BlockSpec((1, dim_p), lambda i, k: (0, 0)),                     # b2
    ]
    out_spec = pl.BlockSpec((tm_eff, dim_p), lambda i, k: (i, 0))

    if use_acc:
        kernel = _expert_kernel_acc
        scratch = [pltpu.VMEM((tm_eff, dim_p), jnp.float32)]
    else:
        kernel = _expert_kernel_f32
        scratch = []

    out = pl.pallas_call(
        kernel,
        out_shape=jax.ShapeDtypeStruct((M_p, dim_p), orig_dtype),
        grid_spec=pltpu.PrefetchScalarGridSpec(
            num_scalar_prefetch=0,
            grid=(grid_m, n_k),
            in_specs=in_specs,
            out_specs=out_spec,
            scratch_shapes=scratch,
        ),
        compiler_params=pltpu.CompilerParams(
            dimension_semantics=("parallel", "arbitrary"),
            vmem_limit_bytes=vmem_limit,
        ),
    )(xb, params["w1"], params["b1"], params["w2"], params["b2"])

    return out[:M, :dim].reshape(orig_shape)


def init_expert_params(key, dim, inter_dim, dtype=jnp.float32):
    """Deterministic nn.Linear-style init: U(-1/sqrt(fan_in), 1/sqrt(fan_in)).
    Weights are stored as (in_features, out_features) (transposed vs torch)."""
    k1, k2, k3, k4 = jax.random.split(key, 4)
    lim1 = 1.0 / jnp.sqrt(dim)
    lim2 = 1.0 / jnp.sqrt(inter_dim)
    w1 = jax.random.uniform(k1, (dim, inter_dim), dtype, -lim1, lim1)
    b1 = jax.random.uniform(k2, (inter_dim,), dtype, -lim1, lim1)
    w2 = jax.random.uniform(k3, (inter_dim, dim), dtype, -lim2, lim2)
    b2 = jax.random.uniform(k4, (dim,), dtype, -lim2, lim2)
    return w1, b1, w2, b2


if __name__ == "__main__":
    # Small shapes: batch=2, seq=8, dim=32, inter_dim=64 -> M = 16 tokens.
    batch, seq, dim, inter_dim = 2, 8, 32, 64

    key = jax.random.PRNGKey(0)
    kx, kp = jax.random.split(key)
    x = jax.random.normal(kx, (batch, seq, dim), dtype=jnp.float32)
    w1, b1, w2, b2 = init_expert_params(kp, dim, inter_dim)

    # One-time weight prep (cached across forwards in real use).
    params = prepare_expert_params(w1, b1, w2, b2)

    out = expert_forward(x, params)
    out = jax.block_until_ready(out)

    # Pure-JAX reference (dropout in eval mode == identity), mirroring the
    # kernel's bf16-input / f32-accumulate numerics.
    xb = x.astype(jnp.bfloat16).astype(jnp.float32)
    w1b = w1.astype(jnp.bfloat16).astype(jnp.float32)
    w2b = w2.astype(jnp.bfloat16).astype(jnp.float32)
    h = jnp.maximum(xb @ w1b + b1, 0.0)
    hb = h.astype(jnp.bfloat16).astype(jnp.float32)
    ref = hb @ w2b + b2

    assert out.shape == x.shape
    assert out.dtype == x.dtype
    assert jnp.allclose(out, ref, atol=2e-3, rtol=2e-3), "mismatch vs reference"

    print("KERNEL_OK")
</pallas_src>

<mosaic_0001>
module attributes {stable_mosaic.version = 11 : i64} {
  func.func @_expert_kernel_f32(%arg0: i32, %arg1: i32, %arg2: memref<16x128xbf16, #tpu.memory_space<vmem>>, %arg3: memref<1x128x128xbf16, #tpu.memory_space<vmem>>, %arg4: memref<1x128xf32, #tpu.memory_space<vmem>>, %arg5: memref<128x128xbf16, #tpu.memory_space<vmem>>, %arg6: memref<1x128xf32, #tpu.memory_space<vmem>>, %arg7: memref<16x128xf32, #tpu.memory_space<vmem>>) attributes {dimension_semantics = [#tpu.dimension_semantics<parallel>, #tpu.dimension_semantics<arbitrary>], iteration_bounds = array<i64: 1, 1>, scalar_prefetch = 0 : i64, scratch_operands = 0 : i64, tpu.core_type = #tpu.core_type<tc>, window_params = [{transform_indices = @transform_0, window_bounds = array<i64: 16, 128>}, {transform_indices = @transform_1, window_bounds = array<i64: 1, 128, 128>}, {transform_indices = @transform_2, window_bounds = array<i64: 1, 128>}, {transform_indices = @transform_3, window_bounds = array<i64: 128, 128>}, {pipeline_mode = #tpu.pipeline_mode<synchronous>, transform_indices = @transform_4, window_bounds = array<i64: 1, 128>}, {transform_indices = @transform_5, window_bounds = array<i64: 16, 128>}]} {
    %c0_i32 = arith.constant 0 : i32
    %0 = arith.cmpi eq, %arg1, %c0_i32 : i32
    %1 = arith.extui %0 : i1 to i32
    %c0_i32_0 = arith.constant 0 : i32
    %2 = arith.cmpi ne, %1, %c0_i32_0 : i32
    scf.if %2 {
      %c0_15 = arith.constant 0 : index
      %c0_16 = arith.constant 0 : index
      %18 = vector.load %arg6[%c0_15, %c0_16] : memref<1x128xf32, #tpu.memory_space<vmem>>, vector<1x128xf32>
      %19 = vector.shape_cast %18 : vector<1x128xf32> to vector<1x128xf32>
      %20 = vector.broadcast %19 : vector<1x128xf32> to vector<16x128xf32>
      %c0_17 = arith.constant 0 : index
      %c0_18 = arith.constant 0 : index
      %21 = vector.load %arg7[%c0_17, %c0_18] : memref<16x128xf32, #tpu.memory_space<vmem>>, vector<16x128xf32>
      tpu.vector_store %arg7[%c0_17, %c0_18], %20 {strides = array<i32>} : memref<16x128xf32, #tpu.memory_space<vmem>>, vector<16x128xf32>,
    } else {
    }
    %c0 = arith.constant 0 : index
    %c0_1 = arith.constant 0 : index
    %3 = vector.load %arg2[%c0, %c0_1] : memref<16x128xbf16, #tpu.memory_space<vmem>>, vector<16x128xbf16>
    %c0_2 = arith.constant 0 : index
    %c0_3 = arith.constant 0 : index
    %c0_4 = arith.constant 0 : index
    %4 = vector.load %arg3[%c0_2, %c0_3, %c0_4] : memref<1x128x128xbf16, #tpu.memory_space<vmem>>, vector<1x128x128xbf16>
    %5 = vector.shape_cast %4 : vector<1x128x128xbf16> to vector<128x128xbf16>
    %cst = arith.constant dense<0.000000e+00> : vector<16x128xf32>
    %6 = tpu.matmul %3, %5, %cst {dimension_numbers = #tpu.dot_dimension_numbers<[1], [0], [0], [1], [0, 0, 1, 1], [], []>} : vector<16x128xbf16>, vector<128x128xbf16>, vector<16x128xf32> -> vector<16x128xf32>
    %c0_5 = arith.constant 0 : index
    %c0_6 = arith.constant 0 : index
    %7 = vector.load %arg4[%c0_5, %c0_6] : memref<1x128xf32, #tpu.memory_space<vmem>>, vector<1x128xf32>
    %8 = vector.broadcast %7 : vector<1x128xf32> to vector<16x128xf32>
    %9 = arith.addf %6, %8 : vector<16x128xf32>
    %cst_7 = arith.constant 0.000000e+00 : f32
    %10 = vector.broadcast %cst_7 : f32 to vector<16x128xf32>
    %11 = arith.maximumf %9, %10 : vector<16x128xf32>
    %c0_8 = arith.constant 0 : index
    %c0_9 = arith.constant 0 : index
    %12 = vector.load %arg7[%c0_8, %c0_9] : memref<16x128xf32, #tpu.memory_space<vmem>>, vector<16x128xf32>
    %13 = arith.truncf %11 : vector<16x128xf32> to vector<16x128xbf16>
    %c0_10 = arith.constant 0 : index
    %c0_11 = arith.constant 0 : index
    %14 = vector.load %arg5[%c0_10, %c0_11] : memref<128x128xbf16, #tpu.memory_space<vmem>>, vector<128x128xbf16>
    %cst_12 = arith.constant dense<0.000000e+00> : vector<16x128xf32>
    %15 = tpu.matmul %13, %14, %cst_12 {dimension_numbers = #tpu.dot_dimension_numbers<[1], [0], [0], [1], [0, 0, 1, 1], [], []>} : vector<16x128xbf16>, vector<128x128xbf16>, vector<16x128xf32> -> vector<16x128xf32>
    %16 = arith.addf %12, %15 : vector<16x128xf32>
    %c0_13 = arith.constant 0 : index
    %c0_14 = arith.constant 0 : index
    %17 = vector.load %arg7[%c0_13, %c0_14] : memref<16x128xf32, #tpu.memory_space<vmem>>, vector<16x128xf32>
    tpu.vector_store %arg7[%c0_13, %c0_14], %16 {strides = array<i32>} : memref<16x128xf32, #tpu.memory_space<vmem>>, vector<16x128xf32>,
    return
  }
  func.func @transform_0(%arg0: i32, %arg1: i32) -> (i32, i32) {
    %c0_i32 = arith.constant 0 : i32
    %c0_i32_0 = arith.constant 0 : i32
    return %arg0, %c0_i32 : i32, i32
  }
  func.func @transform_1(%arg0: i32, %arg1: i32) -> (i32, i32, i32) {
    %c0_i32 = arith.constant 0 : i32
    %c0_i32_0 = arith.constant 0 : i32
    %c0_i32_1 = arith.constant 0 : i32
    return %arg1, %c0_i32, %c0_i32_0 : i32, i32, i32
  }
  func.func @transform_2(%arg0: i32, %arg1: i32) -> (i32, i32) {
    %c0_i32 = arith.constant 0 : i32
    %c0_i32_0 = arith.constant 0 : i32
    return %c0_i32, %arg1 : i32, i32
  }
  func.func @transform_3(%arg0: i32, %arg1: i32) -> (i32, i32) {
    %c0_i32 = arith.constant 0 : i32
    %c0_i32_0 = arith.constant 0 : i32
    return %arg1, %c0_i32 : i32, i32
  }
  func.func @transform_4(%arg0: i32, %arg1: i32) -> (i32, i32) {
    %c0_i32 = arith.constant 0 : i32
    %c0_i32_0 = arith.constant 0 : i32
    %c0_i32_1 = arith.constant 0 : i32
    return %c0_i32, %c0_i32_0 : i32, i32
  }
  func.func @transform_5(%arg0: i32, %arg1: i32) -> (i32, i32) {
    %c0_i32 = arith.constant 0 : i32
    %c0_i32_0 = arith.constant 0 : i32
    return %arg0, %c0_i32 : i32, i32
  }
}

</mosaic_0001>

<bundles_post_ra>
// kernel: tpu_custom_call.1
= control target key start
LH: loop header
LB: loop body
LE: loop exit
PB: predicated region body
PF: predicated region fallthrough
CT: control target
= control target key end

     0   :  { %10 = vsyncpa [#allocation3], 0  ;;  %s636_s0 = inlined_call_operand.hbm [shape: bf16[16,128], index: 0, kind: input, shape index: {}]   ;;  %s637_s1 = inlined_call_operand.hbm [shape: bf16[1,128,128], index: 1, kind: input, shape index: {}]   ;;  %s638_s2 = inlined_call_operand.vmem [shape: f32[1,128], index: 2, kind: input, shape index: {}]   ;;  %s639_s3 = inlined_call_operand.hbm [shape: bf16[128,128], index: 3, kind: input, shape index: {}]   ;;  %s640_s4 = inlined_call_operand.vmem [shape: f32[1,128], index: 4, kind: input, shape index: {}]   ;;  %s641_s5 = inlined_call_operand.hbm [shape: f32[16,128], index: 5, kind: output, shape index: {}]  }
   0x1   :  { %11 = vsyncpa [#allocation6], 0 }
   0x2   :  { %12 = vsyncpa [#allocation4], 0  ;;  %s526_s18 = smov [#allocation5]   ;;  %s527_s20 = smov [#allocation2]  }
   0x3   :  { %s30_s19 = sshll.u32 %s526_s18, 4  ;;  %s18_s21 = sshll.u32 %s527_s20, 4  ;;  %s31_s19 = int_to_ptr.vmem [resolvable:$true] %s30_s19  ;;  %s566_s21 = int_to_ptr.vmem [resolvable:$true] %s18_s21 }
   0x4   :  { %s432_s24 = scalar_lea.hbm %s637_s1, 1024 }
   0x5   :  { %p433_p0 = scmp.ne.s32.totalorder %s637_s1, %s432_s24  ;;  %p436_p1 = scmp.lt.u32.totalorder %s432_s24, %s637_s1 }
   0x7   :  { %p438_p2 = pnand %p436_p1, %p433_p0 }
   0x9   :  { %441 = shalt.err (!%p438_p2)
}
   0xa   :  { %s442_s29 = scalar_lea.vmem %s31_s19, 1024  ;;  %p447_p4 = scmp.lt.s32.totalorder %s31_s19, %s31_s19 }
   0xb   :  { %p443_p3 = scmp.ne.s32.totalorder %s31_s19, %s442_s29  ;;  %p448_p5 = scmp.lt.s32.totalorder %s442_s29, %s442_s29 }
   0xd   :  { %p449_p6 = por %p448_p5, %p447_p4 }
   0xf   :  { %p450_p7 = pnand %p449_p6, %p443_p3 }
  0x11   :  { %453 = shalt.err (!%p450_p7)
}
  0x12   :  { %s528_s30 = smov 64   ;;  %s529_s6 = smov 4  }
  0x13   :  { %36 = dma.hbm_to_vmem [thread:$0]  %s637_s1, 1024, %s31_s19, [#allocation6], %s528_s30, %s528_s30, %s529_s6  }
  0x14   :  { %s454_s11 = scalar_lea.hbm %s636_s0, 128 }
  0x15   :  { %p455_p8 = scmp.ne.s32.totalorder %s636_s0, %s454_s11  ;;  %p458_p9 = scmp.lt.u32.totalorder %s454_s11, %s636_s0 }
  0x17   :  { %p460_p10 = pnand %p458_p9, %p455_p8 }
  0x19   :  { %463 = shalt.err (!%p460_p10)
}
  0x1a   :  { %s464_s16 = scalar_lea.vmem %s566_s21, 128  ;;  %p469_p12 = scmp.lt.s32.totalorder %s566_s21, %s566_s21 }
  0x1b   :  { %p465_p11 = scmp.ne.s32.totalorder %s566_s21, %s464_s16  ;;  %p470_p13 = scmp.lt.s32.totalorder %s464_s16, %s464_s16 }
  0x1d   :  { %p471_p0 = por %p470_p13, %p469_p12 }
  0x1f   :  { %p472_p1 = pnand %p471_p0, %p465_p11 }
  0x21   :  { %475 = shalt.err (!%p472_p1)
}
  0x22   :  { %24 = dma.hbm_to_vmem [thread:$0]  %s636_s0, 128, %s566_s21, [#allocation3], %s528_s30, %s528_s30, %s529_s6  }
  0x23   :  { %s530_s18 = smov [#allocation7]   ;;  %s476_s23 = scalar_lea.hbm %s639_s3, 1024 }
  0x24   :  { %s44_s19 = sshll.u32 %s530_s18, 4  ;;  %p477_p2 = scmp.ne.s32.totalorder %s639_s3, %s476_s23  ;;  %s45_s19 = int_to_ptr.vmem [resolvable:$true] %s44_s19 }
  0x25   :  { %p480_p3 = scmp.lt.u32.totalorder %s476_s23, %s639_s3 }
  0x27   :  { %p482_p4 = pnand %p480_p3, %p477_p2 }
  0x29   :  { %485 = shalt.err (!%p482_p4)
}
  0x2a   :  { %s486_s28 = scalar_lea.vmem %s45_s19, 1024  ;;  %p491_p6 = scmp.lt.s32.totalorder %s45_s19, %s45_s19 }
  0x2b   :  { %p487_p5 = scmp.ne.s32.totalorder %s45_s19, %s486_s28  ;;  %p492_p7 = scmp.lt.s32.totalorder %s486_s28, %s486_s28 }
  0x2d   :  { %p493_p8 = por %p492_p7, %p491_p6 }
  0x2f   :  { %p494_p9 = pnand %p493_p8, %p487_p5 }
  0x31   :  { %497 = shalt.err (!%p494_p9)
}
  0x32   :  { %50 = dma.hbm_to_vmem [thread:$0]  %s639_s3, 1024, %s45_s19, [#allocation6], %s528_s30, %s528_s30, %s529_s6  }
  0x33   :  { %520 = dma.done.wait [#allocation3], 128  }
  0x34   :  { %521 = vsyncadd [#allocation3], 4294967168 }
  0x35   :  { %522 = dma.done.wait [#allocation6], 2048  }
  0x36   :  { %523 = vsyncadd [#allocation6], 4294965248  ;;  %v531_v0 = vmov 0.0   ;;  %vm532_vm0 = vmmov 0   ;;  %v415_v1 = vld [vmem:[#allocation5] sm:$0xff]   ;;  %v416_v2 = vld [vmem:[#allocation5 + $0x8] sm:$0xff]  }
  0x37   :  { %365 = vmatprep.subr.bf16.mxu0 %v531_v0  ;;  %381 = vmatprep.mubr.msk.bf16.mxu0 %vm532_vm0, %v531_v0  ;;  %v417_v3 = vld [vmem:[#allocation5 + $0x10] sm:$0xff]   ;;  %v424_v4 = vld [vmem:[#allocation7] sm:$0xff]   ;;  %v418_v5 = vld [vmem:[#allocation5 + $0x18] sm:$0xff]   ;;  %s533_s7 = smov [#allocation8]  }
  0x38   :  { %385 = vmatprep.subr.bf16.mxu1 %v531_v0  ;;  %401 = vmatprep.mubr.msk.bf16.mxu1 %vm532_vm0, %v531_v0  ;;  %v425_v6 = vld [vmem:[#allocation7 + $0x8] sm:$0xff]   ;;  %v419_v7 = vld [vmem:[#allocation5 + $0x20] sm:$0xff]   ;;  %v426_v8 = vld [vmem:[#allocation7 + $0x10] sm:$0xff]   ;;  %s315_s8 = sshll.u32 %s533_s7, 4  ;;  %s316_s8 = int_to_ptr.vmem [resolvable:$true] %s315_s8 }
  0x39   :  { %366 = vmatpush3.bf16.msra.mxu0 %v415_v1  ;;  %386 = vmatpush3.bf16.msra.mxu1 %v424_v4  ;;  %v420_v9 = vld [vmem:[#allocation5 + $0x28] sm:$0xff]   ;;  %v427_v10 = vld [vmem:[#allocation7 + $0x18] sm:$0xff]   ;;  %v421_v11 = vld [vmem:[#allocation5 + $0x30] sm:$0xff]   ;;  %p503_p11 = scmp.lt.s32.totalorder %s316_s8, %s316_s8 }
  0x3a   :  { %367 = vmatprep.subr.bf16.mxu0 %v531_v0  ;;  %387 = vmatprep.subr.bf16.mxu1 %v531_v0  ;;  %v428_v12 = vld [vmem:[#allocation7 + $0x20] sm:$0xff]   ;;  %v422_v13 = vld [vmem:[#allocation5 + $0x38] sm:$0xff]   ;;  %v429_v14 = vld [vmem:[#allocation7 + $0x28] sm:$0xff]  }
  0x3b   :  { %v423_v15 = vld [vmem:[#allocation2] sm:$0xff]   ;;  %v430_v16 = vld [vmem:[#allocation7 + $0x30] sm:$0xff]  }
  0x3c   :  { %v431_v17 = vld [vmem:[#allocation7 + $0x38] sm:$0xff]  }
  0x3d   :  { %368 = vmatpush3.bf16.msra.mxu0 %v416_v2  ;;  %388 = vmatpush3.bf16.msra.mxu1 %v425_v6  ;;  %v329_v18 = vld [vmem:[%s638_s2] ss:$0 sm:$0xff]  ;;  %s498_s2 = scalar_lea.vmem %s316_s8, 256 }
  0x3e   :  { %369 = vmatprep.subr.bf16.mxu0 %v531_v0  ;;  %389 = vmatprep.subr.bf16.mxu1 %v531_v0  ;;  %v328_v28 = vld [vmem:[%s640_s4] ss:$0 sm:$0xff]  ;;  %p499_p10 = scmp.ne.s32.totalorder %s316_s8, %s498_s2  ;;  %p504_p12 = scmp.lt.s32.totalorder %s498_s2, %s498_s2 }
  0x40   :  { %p505_p13 = por %p504_p12, %p503_p11 }
  0x41   :  { %370 = vmatpush3.bf16.msra.mxu0 %v417_v3  ;;  %390 = vmatpush3.bf16.msra.mxu1 %v426_v8 }
  0x42   :  { %371 = vmatprep.subr.bf16.mxu0 %v531_v0  ;;  %391 = vmatprep.subr.bf16.mxu1 %v531_v0  ;;  %p506_p0 = pnand %p505_p13, %p499_p10 }
  0x45   :  { %372 = vmatpush3.bf16.msra.mxu0 %v418_v5  ;;  %392 = vmatpush3.bf16.msra.mxu1 %v427_v10 }
  0x46   :  { %373 = vmatprep.subr.bf16.mxu0 %v531_v0  ;;  %393 = vmatprep.subr.bf16.mxu1 %v531_v0 }
  0x49   :  { %374 = vmatpush3.bf16.msra.mxu0 %v419_v7  ;;  %394 = vmatpush3.bf16.msra.mxu1 %v428_v12 }
  0x4a   :  { %375 = vmatprep.subr.bf16.mxu0 %v531_v0  ;;  %395 = vmatprep.subr.bf16.mxu1 %v531_v0 }
  0x4d   :  { %376 = vmatpush3.bf16.msra.mxu0 %v420_v9  ;;  %396 = vmatpush3.bf16.msra.mxu1 %v429_v14 }
  0x4e   :  { %377 = vmatprep.subr.bf16.mxu0 %v531_v0  ;;  %397 = vmatprep.subr.bf16.mxu1 %v531_v0 }
  0x51   :  { %378 = vmatpush3.bf16.msra.mxu0 %v421_v11  ;;  %398 = vmatpush3.bf16.msra.mxu1 %v430_v16 }
  0x52   :  { %379 = vmatprep.subr.bf16.mxu0 %v531_v0  ;;  %399 = vmatprep.subr.bf16.mxu1 %v531_v0 }
  0x55   :  { %380 = vmatpush3.bf16.msra.mxu0 %v422_v13  ;;  %400 = vmatpush3.bf16.msra.mxu1 %v431_v17 }
  0x58   :  { %382 = vmatmul.mubr.bf16.vlgmr.msra.gmra.mrb[0].mxu0 %v423_v15 }
 0x12b   :  { %v189_v19 = vpop.f32.mrb[0].mxu0 }
 0x12c   :  { %v190_v20 = vadd.f32 %v329_v18, %v189_v19  ;;  %v383_v21 = vpop.f32.mrb[1].mxu0 }
 0x12d   :  { %v192_v22 = vpop.f32.mrb[2].mxu0 }
 0x12e   :  { %v193_v23 = vadd.f32 %v329_v18, %v192_v22  ;;  %v384_v24 = vpop.f32.mrb[3].mxu0  ;;  %v196_v25 = vmax.f32 %v190_v20, 0.0 }
 0x130   :  { %v197_v26 = vmax.f32 %v193_v23, 0.0 }
 0x132   :  { %v200_v27 = vpack.c.bf16 %v197_v26, %v196_v25 }
 0x134   :  { %402 = vmatmul.mubr.bf16.vlgmr.msra.gmra.mrb[0].mxu1 %v200_v27 }
 0x207   :  { %v299_v29 = vpop.f32.mrb[0].mxu1 }
 0x208   :  { %v306_v30 = vadd.f32 %v328_v28, %v299_v29  ;;  %v403_v31 = vpop.f32.mrb[1].mxu1 }
 0x209   :  { %v302_v32 = vpop.f32.mrb[2].mxu1 }
 0x20a   :  { %308 = vst [vmem:[#allocation8] sm:$0xff] %v306_v30  ;;  %v307_v33 = vadd.f32 %v328_v28, %v302_v32  ;;  %v404_v34 = vpop.f32.mrb[3].mxu1 }
 0x20c   :  { %309 = vst [vmem:[#allocation8 + $0x8] sm:$0xff] %v307_v33 }
 0x20d   :  { %509 = shalt.err (!%p506_p0)
}
 0x20e   :  { %s510_s10 = scalar_lea.hbm %s641_s5, 256 }
 0x20f   :  { %p511_p1 = scmp.ne.s32.totalorder %s641_s5, %s510_s10  ;;  %p514_p2 = scmp.lt.u32.totalorder %s510_s10, %s641_s5 }
 0x211   :  { %p516_p3 = pnand %p514_p2, %p511_p1 }
 0x213   :  { %519 = shalt.err (!%p516_p3)
}
 0x214   :  { %s534_s15 = smov 128   ;;  %s535_s16 = smov 8  }
 0x215   :  { %321 = dma.vmem_to_hbm [thread:$0]  %s316_s8, 256, %s641_s5, [#allocation4], %s534_s15, %s534_s15, %s535_s16  }
 0x216   :  { %524 = dma.done.wait [#allocation4], 256  }
 0x217   :  { %525 = vsyncadd [#allocation4], 4294967040 }
 0x218   :  { %325 = vsyncpa [#allocation3], 1 }
 0x219   :  { %326 = vsyncpa [#allocation6], 1 }
 0x21a   :  { %327 = vsyncpa [#allocation4], 1 }

</bundles_post_ra>
